<compile_context>
chip_gen: v6e
topology: v6e:2x2x1
jax: 0.10.0
libtpu: 0.0.40
codegen_flags: <defaults>
</compile_context>

<pallas_src>
import functools

import jax
import jax.numpy as jnp
import numpy as np
from jax import lax
from jax.experimental import pallas as pl
from jax.experimental.pallas import tpu as pltpu


def _round_up(v, m):
    return ((v + m - 1) // m) * m


def _anchor_rows_kernel(pat_ref, out_ref, *, tile_rows):
    """Writes `tile_rows` ky-rows of the final (Hp, Wp*row*line*2) table.

    out[r, q] = pat[0, q] + pat[1, q] * (row_base + r)
    which is already the PyTorch (ky, kx, ay, ax, coord) flat order, so the
    output hits HBM exactly once.
    """
    base = pat_ref[0:1, :]      # (1, C) : x-coords / y-offsets per column
    yscale = pat_ref[1:2, :]    # (1, C) : stride on y-columns, 0 on x-columns

    row_base = pl.program_id(0) * tile_rows
    ky = (lax.broadcasted_iota(jnp.int32, (tile_rows, 1), 0) + row_base).astype(
        jnp.float32
    )                           # (tile_rows, 1)

    out_ref[...] = base + yscale * ky      # broadcast -> (tile_rows, C)


def anchor_points_forward(image, *, pyramid_level=None, stride=None, row=3, line=3):
    """JAX/Pallas equivalent of AnchorPoints.forward.

    `image` is NCHW; only its spatial shape is used (exactly like the PyTorch
    module). Returns float32 array of shape (1, K*A, 2) with
    K = ceil(H/s)*ceil(W/s), A = row*line, flat order (ky, kx, ay, ax),
    last axis = (x, y).
    """
    if stride is None:
        stride = 2 ** pyramid_level

    H, W = image.shape[2], image.shape[3]
    Hp = (H + stride - 1) // stride
    Wp = (W + stride - 1) // stride
    A = row * line
    K = Hp * Wp
    KA = K * A
    C = Wp * A * 2      # columns of the final 2-D view: (kx, ay, ax, coord)

    # ---- compile-time column pattern (float64, matches numpy reference) ----
    line_step = stride / line
    row_step = stride / row
    kx_shift = np.arange(Wp, dtype=np.float64) * float(stride)             # (Wp,)
    x_off = (np.arange(line, dtype=np.float64) + 0.5) * line_step          # (line,)
    y_off = (np.arange(row, dtype=np.float64) + 0.5) * row_step            # (row,)

    base = np.empty((Wp, row, line, 2), dtype=np.float64)
    base[..., 0] = kx_shift[:, None, None] + x_off[None, None, :]
    base[..., 1] = y_off[None, :, None]
    yscale = np.zeros((Wp, row, line, 2), dtype=np.float64)
    yscale[..., 1] = float(stride)
    pat = np.stack([base.reshape(-1), yscale.reshape(-1)], axis=0)          # (2, C)
    pat = jnp.asarray(pat.astype(np.float32))

    # ---- row tiling: multiples of 8 (or full extent), VMEM-capped ----------
    if Hp <= 8:
        tile_rows = Hp                                   # full-extent block
    else:
        bytes_per_row = C * 4
        budget = 6 * 1024 * 1024                         # per buffer (x2 dbl-buf)
        tile_rows = max(8, (budget // max(bytes_per_row, 1)) // 8 * 8)
        # keep >=2 grid steps so the 'parallel' row axis can shard across the
        # two v7x TensorCores (harmless on single-core v5e/v6e).
        half = _round_up((Hp + 1) // 2, 8)
        tile_rows = min(tile_rows, max(8, half), _round_up(Hp, 8))
    grid_rows = pl.cdiv(Hp, tile_rows)

    kernel = functools.partial(_anchor_rows_kernel, tile_rows=tile_rows)

    cost = pl.CostEstimate(
        flops=2 * Hp * C,                       # one FMA per output element
        transcendentals=0,
        bytes_accessed=Hp * C * 4 + 2 * C * 4,  # single write pass + tiny pattern
    )

    out2d = pl.pallas_call(
        kernel,
        out_shape=jax.ShapeDtypeStruct((Hp, C), jnp.float32),
        grid=(grid_rows,),
        in_specs=[pl.BlockSpec((2, C), lambda i: (0, 0))],
        out_specs=pl.BlockSpec((tile_rows, C), lambda i: (i, 0)),
        compiler_params=pltpu.CompilerParams(
            dimension_semantics=("parallel",),
            vmem_limit_bytes=32 * 1024 * 1024,
        ),
        cost_estimate=cost,
    )(pat)

    # Row-major (Hp, Wp*row*line*2) already equals the flat (ky,kx,ay,ax,coord)
    # order, so this reshape is layout-preserving (no extra HBM pass).
    return out2d.reshape(1, KA, 2)


def _numpy_reference(image_shape, stride, row, line):
    """Direct port of the PyTorch module's numpy math for verification."""
    H, W = image_shape[2], image_shape[3]
    shapes = (np.array([H, W]) + stride - 1) // stride

    row_step = stride / row
    line_step = stride / line
    sx = (np.arange(1, line + 1) - 0.5) * line_step - stride / 2
    sy = (np.arange(1, row + 1) - 0.5) * row_step - stride / 2
    sx, sy = np.meshgrid(sx, sy)
    anchor_points = np.vstack((sx.ravel(), sy.ravel())).transpose()

    shift_x = (np.arange(0, shapes[1]) + 0.5) * stride
    shift_y = (np.arange(0, shapes[0]) + 0.5) * stride
    shift_x, shift_y = np.meshgrid(shift_x, shift_y)
    shifts = np.vstack((shift_x.ravel(), shift_y.ravel())).transpose()

    A = anchor_points.shape[0]
    K = shifts.shape[0]
    all_pts = anchor_points.reshape((1, A, 2)) + shifts.reshape((1, K, 2)).transpose(
        (1, 0, 2)
    )
    all_pts = all_pts.reshape((K * A, 2))
    return np.expand_dims(all_pts.astype(np.float32), axis=0)


if __name__ == "__main__":
    key = jax.random.PRNGKey(0)
    # Small NCHW image; only its shape matters (as in the reference module).
    image = jax.random.normal(key, (2, 4, 16, 16), dtype=jnp.float32)

    pyramid_level = 3  # stride = 2**3 = 8
    row, line = 3, 3

    out = anchor_points_forward(
        image, pyramid_level=pyramid_level, stride=None, row=row, line=line
    )
    out = jax.block_until_ready(out)

    ref = _numpy_reference(image.shape, stride=2 ** pyramid_level, row=row, line=line)
    np.testing.assert_allclose(np.asarray(out), ref, rtol=1e-5, atol=1e-5)

    print("KERNEL_OK")
</pallas_src>

<mosaic_0001>
module attributes {stable_mosaic.version = 11 : i64} {
  func.func @_anchor_rows_kernel(%arg0: i32, %arg1: memref<2x36xf32, #tpu.memory_space<vmem>>, %arg2: memref<2x36xf32, #tpu.memory_space<vmem>>) attributes {dimension_semantics = [#tpu.dimension_semantics<parallel>], iteration_bounds = array<i64: 1>, scalar_prefetch = 0 : i64, scratch_operands = 0 : i64, tpu.core_type = #tpu.core_type<tc>, window_params = [{pipeline_mode = #tpu.pipeline_mode<synchronous>, transform_indices = @transform_0, window_bounds = array<i64: 2, 36>}, {transform_indices = @transform_1, window_bounds = array<i64: 2, 36>}]} {
    %c0 = arith.constant 0 : index
    %c0_0 = arith.constant 0 : index
    %0 = vector.load %arg1[%c0, %c0_0] : memref<2x36xf32, #tpu.memory_space<vmem>>, vector<1x36xf32>
    %c1 = arith.constant 1 : index
    %c0_1 = arith.constant 0 : index
    %1 = vector.load %arg1[%c1, %c0_1] : memref<2x36xf32, #tpu.memory_space<vmem>>, vector<1x36xf32>
    %c2_i32 = arith.constant 2 : i32
    %2 = arith.muli %arg0, %c2_i32 : i32
    %3 = tpu.iota {dimensions = array<i32: 0>} : vector<2x1xi32>
    %4 = vector.broadcast %2 : i32 to vector<2x1xi32>
    %5 = arith.addi %3, %4 : vector<2x1xi32>
    %6 = arith.sitofp %5 : vector<2x1xi32> to vector<2x1xf32>
    %7 = vector.broadcast %1 : vector<1x36xf32> to vector<2x36xf32>
    %8 = vector.broadcast %6 : vector<2x1xf32> to vector<2x36xf32>
    %9 = arith.mulf %7, %8 : vector<2x36xf32>
    %10 = vector.broadcast %0 : vector<1x36xf32> to vector<2x36xf32>
    %11 = arith.addf %10, %9 : vector<2x36xf32>
    %c0_2 = arith.constant 0 : index
    %c0_3 = arith.constant 0 : index
    %12 = vector.load %arg2[%c0_2, %c0_3] : memref<2x36xf32, #tpu.memory_space<vmem>>, vector<2x36xf32>
    tpu.vector_store %arg2[%c0_2, %c0_3], %11 {strides = array<i32>} : memref<2x36xf32, #tpu.memory_space<vmem>>, vector<2x36xf32>,
    return
  }
  func.func @transform_0(%arg0: i32) -> (i32, i32) {
    %c0_i32 = arith.constant 0 : i32
    %c0_i32_0 = arith.constant 0 : i32
    %c0_i32_1 = arith.constant 0 : i32
    return %c0_i32, %c0_i32_0 : i32, i32
  }
  func.func @transform_1(%arg0: i32) -> (i32, i32) {
    %c0_i32 = arith.constant 0 : i32
    %c0_i32_0 = arith.constant 0 : i32
    return %arg0, %c0_i32 : i32, i32
  }
}

</mosaic_0001>

<bundles_post_ra>
// kernel: tpu_custom_call.1
= control target key start
LH: loop header
LB: loop body
LE: loop exit
PB: predicated region body
PF: predicated region fallthrough
CT: control target
= control target key end

     0   :  { %6 = vsyncpa [#allocation3], 0  ;;  %s122_s0 = inlined_call_operand.hbm [shape: f32[2,36], index: 0, kind: input, shape index: {}]   ;;  %s123_s1 = inlined_call_operand.hbm [shape: f32[2,36], index: 1, kind: output, shape index: {}]  }
   0x1   :  { %7 = vsyncpa [#allocation4], 0  ;;  %s104_s6 = smov [#allocation2]  }
   0x2   :  { %s14_s7 = sshll.u32 %s104_s6, 4  ;;  %s15_s7 = int_to_ptr.vmem [resolvable:$true] %s14_s7 }
   0x3   :  { %s68_s8 = scalar_lea.vmem %s15_s7, 32  ;;  %p73_p1 = scmp.lt.s32.totalorder %s15_s7, %s15_s7 }
   0x4   :  { %p69_p0 = scmp.ne.s32.totalorder %s15_s7, %s68_s8  ;;  %p74_p2 = scmp.lt.s32.totalorder %s68_s8, %s68_s8 }
   0x6   :  { %p75_p3 = por %p74_p2, %p73_p1 }
   0x8   :  { %p76_p4 = pnand %p75_p3, %p69_p0 }
   0xa   :  { %79 = shalt.err (!%p76_p4)
}
   0xb   :  { %17 = dma.hbm_to_vmem [thread:$0]  %s122_s0, 32, %s15_s7, [#allocation3]  }
   0xc   :  { %100 = dma.done.wait [#allocation3], 32  }
   0xd   :  { %101 = vsyncadd [#allocation3], 4294967264  ;;  %v24_v0 = vlaneseq  ;;  %v57_v3 = vld [vmem:[#allocation2] ss:$0 sm:$0xff]  ;;  %v56_v4 = vld [vmem:[#allocation2 + $0x1] ss:$0 sm:$0xff] }
   0xe   :  { %s105_s11 = smov [#allocation5]   ;;  %vm39_vm0 = vcmask 287744  }
   0xf   :  { %v25_v1 = vshrl.u32 %v24_v0, 7  ;;  %s47_s12 = sshll.u32 %s105_s11, 4  ;;  %s48_s12 = int_to_ptr.vmem [resolvable:$true] %s47_s12 }
  0x10   :  { %s80_s13 = scalar_lea.vmem %s48_s12, 32  ;;  %p85_p6 = scmp.lt.s32.totalorder %s48_s12, %s48_s12 }
  0x11   :  { %v28_v2 = vcvt.s32.f32 %v25_v1  ;;  %p81_p5 = scmp.ne.s32.totalorder %s48_s12, %s80_s13  ;;  %p86_p7 = scmp.lt.s32.totalorder %s80_s13, %s80_s13 }
  0x13   :  { %v33_v5 = vmul.f32 %v56_v4, %v28_v2  ;;  %p87_p8 = por %p86_p7, %p85_p6 }
  0x15   :  { %v38_v6 = vadd.f32 %v57_v3, %v33_v5  ;;  %p88_p9 = pnand %p87_p8, %p81_p5 }
  0x17   :  { %40 = vst.msk [vmem:[#allocation5] sm:$0x3] %vm39_vm0, %v38_v6 }
  0x18   :  { %91 = shalt.err (!%p88_p9)
}
  0x19   :  { %50 = dma.vmem_to_hbm [thread:$0]  %s48_s12, 32, %s123_s1, [#allocation4]  }
  0x1a   :  { %102 = dma.done.wait [#allocation4], 32  }
  0x1b   :  { %103 = vsyncadd [#allocation4], 4294967264 }
  0x1c   :  { %54 = vsyncpa [#allocation3], 1 }
  0x1d   :  { %55 = vsyncpa [#allocation4], 1 }

</bundles_post_ra>
